<compile_context>
chip_gen: v5e
topology: v5e:2x2
jax: 0.10.0
libtpu: 0.0.40
codegen_flags: <defaults>
</compile_context>

<pallas_src>
import functools

import jax
import jax.numpy as jnp
from jax.experimental import pallas as pl
from jax.experimental.pallas import tpu as pltpu


# ------------------------------ fused kernel -----------------------------------
def _mvc_head_kernel(x_ref, w_ref, b_ref, selt_ref, view_ref, group_ref,
                     *, inv_pool, num_groups):
    # x_ref:    (TB, PW, D)   features, window-pixel-major (PW pixels / pooled cell)
    # w_ref:    (D, NG+NV)    fused router ++ view-ordered head weights
    # b_ref:    (1, NG+NV)    fused bias
    # selt_ref: (NG, NV)      one-hot group -> view selection matrix
    # view_ref: (TB, NV)      output: mixed view logits
    # group_ref:(TB, NG)      output: router (group) logits
    x = x_ref[...].astype(jnp.float32)                         # (TB, PW, D)

    # AdaptiveAvgPool2d((4,4)) + Flatten: mean over the PW window pixels.
    pooled = jnp.sum(x, axis=1) * inv_pool                     # (TB, D)

    # One MXU matmul for router + all group heads, f32 accumulation.
    logits = jnp.dot(pooled, w_ref[...],
                     preferred_element_type=jnp.float32) + b_ref[...]   # (TB, NG+NV)
    grp = logits[:, :num_groups]                               # (TB, NG)
    raw = logits[:, num_groups:]                               # (TB, NV)

    # softmax over the NG group logits (tiny lane reduction).
    m = jnp.max(grp, axis=1, keepdims=True)
    e = jnp.exp(grp - m)
    probs = e / jnp.sum(e, axis=1, keepdims=True)              # (TB, NG)

    # per-view group probability: pview[b, v] = probs[b, group_of_view[v]]
    pview = jnp.dot(probs, selt_ref[...],
                    preferred_element_type=jnp.float32)        # (TB, NV)

    view_ref[...] = raw * pview
    group_ref[...] = grp


# -------------------------------- wrapper ---------------------------------------
def multiview_classifier_head(feat_map, router_w, router_b, head_ws, head_bs,
                              group_to_labels, view_to_group, *, batch_tile=8):
    """feat_map: (N, C, Hf, Wf) backbone features (any float dtype).
    router_w: (NG, C*16), router_b: (NG,); head_ws/head_bs: dict per group.
    Returns (view_logits (N, NV), group_logits (N, NG)) in float32."""
    N, C, Hf, Wf = feat_map.shape
    assert Hf % 4 == 0 and Wf % 4 == 0, "uniform 4x4 adaptive pool assumed"
    # TODO(synk): AdaptiveAvgPool2d with H/W not divisible by 4 (uneven
    # adaptive windows, e.g. 7x7 maps) is not implemented.
    bh, bw = Hf // 4, Wf // 4
    PW = bh * bw                      # pixels per pooled cell
    D = C * 16                        # feature_dim after pool+flatten
    group_names = list(group_to_labels.keys())
    NG = len(group_names)
    NV = max(max(v) for v in group_to_labels.values()) + 1
    f32 = jnp.float32

    all_vids = sorted(v for vs in group_to_labels.values() for v in vs)
    assert all_vids == list(range(NV)), \
        "every view id 0..NV-1 must appear exactly once in group_to_labels"

    # Window-pixel-major layout: x_r[n, p, d] with p = within-window pixel,
    # d = c*16 + i*4 + j  (matches Flatten of the pooled (C, 4, 4) map).
    # Single XLA layout pass; keep the backbone dtype (no host f32 upcast).
    x_r = feat_map.reshape(N, C, 4, bh, 4, bw).transpose(0, 3, 5, 1, 2, 4)
    x_r = x_r.reshape(N, PW, D)

    # Fused (router ++ view-id-ordered heads) weight / bias.
    wv_rows, bv_vals = [None] * NV, [None] * NV
    for gname in group_names:
        wg = head_ws[gname].astype(f32)
        bg = head_bs[gname].astype(f32)
        for j, vid in enumerate(group_to_labels[gname]):
            wv_rows[vid] = wg[j]
            bv_vals[vid] = bg[j]
    w_all = jnp.concatenate([router_w.astype(f32), jnp.stack(wv_rows)],
                            axis=0).T                          # (D, NG+NV)
    b_all = jnp.concatenate([router_b.astype(f32),
                             jnp.stack(bv_vals)]).reshape(1, NG + NV)

    # One-hot group -> view selection matrix (transposed for (TB,NG)@(NG,NV)).
    gidx = jnp.array([group_names.index(view_to_group[v]) for v in range(NV)])
    sel_t = (jnp.arange(NG)[:, None] == gidx[None, :]).astype(f32)   # (NG, NV)

    # Batch tile: multiple of 8 (sublane constraint on the output blocks).
    TB = max(8, (batch_tile // 8) * 8)
    n_pad = pl.cdiv(N, TB) * TB
    if n_pad != N:
        x_r = jnp.concatenate(
            [x_r, jnp.zeros((n_pad - N, PW, D), x_r.dtype)], axis=0)

    kernel = functools.partial(_mvc_head_kernel,
                               inv_pool=1.0 / PW, num_groups=NG)

    view, group = pl.pallas_call(
        kernel,
        out_shape=(jax.ShapeDtypeStruct((n_pad, NV), f32),
                   jax.ShapeDtypeStruct((n_pad, NG), f32)),
        grid=(n_pad // TB,),
        in_specs=[
            pl.BlockSpec((TB, PW, D), lambda n: (n, 0, 0)),    # per-batch-tile
            pl.BlockSpec((D, NG + NV), lambda n: (0, 0)),      # resident weights
            pl.BlockSpec((1, NG + NV), lambda n: (0, 0)),
            pl.BlockSpec((NG, NV), lambda n: (0, 0)),
        ],
        out_specs=(
            pl.BlockSpec((TB, NV), lambda n: (n, 0)),          # lane-dense
            pl.BlockSpec((TB, NG), lambda n: (n, 0)),
        ),
        compiler_params=pltpu.CompilerParams(
            dimension_semantics=("parallel",)),
    )(x_r, w_all, b_all, sel_t)

    return view[:N], group[:N]


# ----------------------------------- test ---------------------------------------
if __name__ == "__main__":
    N, C, Hf, Wf = 2, 32, 16, 16          # batch, feature_channels, feature map
    view_to_group = {0: 'other', 1: 'psax', 2: 'psax', 3: 'apical', 4: 'apical',
                     5: 'apical', 6: 'apical', 7: 'other', 8: 'other'}
    group_to_labels = {'apical': [3, 4, 5, 6], 'psax': [2, 1], 'other': [0, 8, 7]}
    group_names = list(group_to_labels.keys())
    NG = len(group_names)
    NV = max(max(v) for v in group_to_labels.values()) + 1
    D = C * 4 * 4                          # feature_dim

    key = jax.random.PRNGKey(0)
    keys = jax.random.split(key, 4 + 2 * NG)
    feat_map = jax.random.normal(keys[0], (N, C, Hf, Wf), dtype=jnp.float32)
    router_w = 0.05 * jax.random.normal(keys[1], (NG, D), dtype=jnp.float32)
    router_b = 0.05 * jax.random.normal(keys[2], (NG,), dtype=jnp.float32)
    head_ws, head_bs = {}, {}
    for i, g in enumerate(group_names):
        nl = len(group_to_labels[g])
        head_ws[g] = 0.05 * jax.random.normal(keys[3 + 2 * i], (nl, D),
                                              dtype=jnp.float32)
        head_bs[g] = 0.05 * jax.random.normal(keys[4 + 2 * i], (nl,),
                                              dtype=jnp.float32)

    view_logits, group_logits = jax.block_until_ready(
        multiview_classifier_head(feat_map, router_w, router_b, head_ws,
                                  head_bs, group_to_labels, view_to_group))

    # ---- pure-JAX reference mirroring the PyTorch module ----
    pooled = feat_map.reshape(N, C, 4, Hf // 4, 4, Wf // 4).mean(axis=(3, 5))
    feats = pooled.reshape(N, D)
    ref_group = feats @ router_w.T + router_b
    probs = jax.nn.softmax(ref_group, axis=1)
    ref_view = jnp.zeros((N, NV), jnp.float32)
    for i, g in enumerate(group_names):
        gl = feats @ head_ws[g].T + head_bs[g]
        for j, vid in enumerate(group_to_labels[g]):
            ref_view = ref_view.at[:, vid].add(probs[:, i] * gl[:, j])

    assert view_logits.shape == (N, NV) and group_logits.shape == (N, NG)
    err_v = float(jnp.max(jnp.abs(view_logits - ref_view)))
    err_g = float(jnp.max(jnp.abs(group_logits - ref_group)))
    assert err_v < 1e-4 and err_g < 1e-4, (
        "mismatch: view err=%e group err=%e" % (err_v, err_g))
    print("KERNEL_OK")
</pallas_src>

<mosaic_0001>
module attributes {stable_mosaic.version = 11 : i64} {
  func.func @_mvc_head_kernel(%arg0: i32, %arg1: memref<8x16x512xf32, #tpu.memory_space<vmem>>, %arg2: memref<512x12xf32, #tpu.memory_space<vmem>>, %arg3: memref<1x12xf32, #tpu.memory_space<vmem>>, %arg4: memref<3x9xf32, #tpu.memory_space<vmem>>, %arg5: memref<8x9xf32, #tpu.memory_space<vmem>>, %arg6: memref<8x3xf32, #tpu.memory_space<vmem>>) attributes {dimension_semantics = [#tpu.dimension_semantics<parallel>], iteration_bounds = array<i64: 1>, scalar_prefetch = 0 : i64, scratch_operands = 0 : i64, tpu.core_type = #tpu.core_type<tc>, window_params = [{transform_indices = @transform_0, window_bounds = array<i64: 8, 16, 512>}, {pipeline_mode = #tpu.pipeline_mode<synchronous>, transform_indices = @transform_1, window_bounds = array<i64: 512, 12>}, {pipeline_mode = #tpu.pipeline_mode<synchronous>, transform_indices = @transform_2, window_bounds = array<i64: 1, 12>}, {pipeline_mode = #tpu.pipeline_mode<synchronous>, transform_indices = @transform_3, window_bounds = array<i64: 3, 9>}, {transform_indices = @transform_4, window_bounds = array<i64: 8, 9>}, {transform_indices = @transform_5, window_bounds = array<i64: 8, 3>}]} {
    %c0 = arith.constant 0 : index
    %c0_0 = arith.constant 0 : index
    %c0_1 = arith.constant 0 : index
    %0 = vector.load %arg1[%c0, %c0_0, %c0_1] : memref<8x16x512xf32, #tpu.memory_space<vmem>>, vector<8x16x512xf32>
    %cst = arith.constant dense<0.000000e+00> : vector<8x512xf32>
    %1 = vector.multi_reduction <add>, %0, %cst [1] : vector<8x16x512xf32> to vector<8x512xf32>
    %cst_2 = arith.constant 6.250000e-02 : f32
    %2 = vector.broadcast %cst_2 : f32 to vector<8x512xf32>
    %3 = arith.mulf %1, %2 : vector<8x512xf32>
    %c0_3 = arith.constant 0 : index
    %c0_4 = arith.constant 0 : index
    %4 = vector.load %arg2[%c0_3, %c0_4] : memref<512x12xf32, #tpu.memory_space<vmem>>, vector<512x12xf32>
    %cst_5 = arith.constant dense<0.000000e+00> : vector<8x12xf32>
    %5 = tpu.matmul %3, %4, %cst_5 {dimension_numbers = #tpu.dot_dimension_numbers<[1], [0], [0], [1], [0, 0, 1, 1], [], []>} : vector<8x512xf32>, vector<512x12xf32>, vector<8x12xf32> -> vector<8x12xf32>
    %c0_6 = arith.constant 0 : index
    %c0_7 = arith.constant 0 : index
    %6 = vector.load %arg3[%c0_6, %c0_7] : memref<1x12xf32, #tpu.memory_space<vmem>>, vector<1x12xf32>
    %7 = vector.broadcast %6 : vector<1x12xf32> to vector<8x12xf32>
    %8 = arith.addf %5, %7 : vector<8x12xf32>
    %9 = vector.extract_strided_slice %8 {offsets = [0, 0], sizes = [8, 3], strides = [1, 1]} : vector<8x12xf32> to vector<8x3xf32>
    %10 = vector.extract_strided_slice %8 {offsets = [0, 3], sizes = [8, 9], strides = [1, 1]} : vector<8x12xf32> to vector<8x9xf32>
    %cst_8 = arith.constant dense<0xFF800000> : vector<8xf32>
    %11 = vector.multi_reduction <maximumf>, %9, %cst_8 [1] : vector<8x3xf32> to vector<8xf32>
    %12 = vector.shape_cast %11 : vector<8xf32> to vector<8x1xf32>
    %13 = vector.broadcast %12 : vector<8x1xf32> to vector<8x3xf32>
    %14 = arith.subf %9, %13 : vector<8x3xf32>
    %15 = math.exp %14 : vector<8x3xf32>
    %cst_9 = arith.constant dense<0.000000e+00> : vector<8xf32>
    %16 = vector.multi_reduction <add>, %15, %cst_9 [1] : vector<8x3xf32> to vector<8xf32>
    %17 = vector.shape_cast %16 : vector<8xf32> to vector<8x1xf32>
    %18 = vector.broadcast %17 : vector<8x1xf32> to vector<8x3xf32>
    %19 = arith.divf %15, %18 : vector<8x3xf32>
    %c0_10 = arith.constant 0 : index
    %c0_11 = arith.constant 0 : index
    %20 = vector.load %arg4[%c0_10, %c0_11] : memref<3x9xf32, #tpu.memory_space<vmem>>, vector<3x9xf32>
    %cst_12 = arith.constant dense<0.000000e+00> : vector<8x9xf32>
    %21 = tpu.matmul %19, %20, %cst_12 {dimension_numbers = #tpu.dot_dimension_numbers<[1], [0], [0], [1], [0, 0, 1, 1], [], []>} : vector<8x3xf32>, vector<3x9xf32>, vector<8x9xf32> -> vector<8x9xf32>
    %22 = arith.mulf %10, %21 : vector<8x9xf32>
    %c0_13 = arith.constant 0 : index
    %c0_14 = arith.constant 0 : index
    %23 = vector.load %arg5[%c0_13, %c0_14] : memref<8x9xf32, #tpu.memory_space<vmem>>, vector<8x9xf32>
    tpu.vector_store %arg5[%c0_13, %c0_14], %22 {strides = array<i32>} : memref<8x9xf32, #tpu.memory_space<vmem>>, vector<8x9xf32>,
    %c0_15 = arith.constant 0 : index
    %c0_16 = arith.constant 0 : index
    %24 = vector.load %arg6[%c0_15, %c0_16] : memref<8x3xf32, #tpu.memory_space<vmem>>, vector<8x3xf32>
    tpu.vector_store %arg6[%c0_15, %c0_16], %9 {strides = array<i32>} : memref<8x3xf32, #tpu.memory_space<vmem>>, vector<8x3xf32>,
    return
  }
  func.func @transform_0(%arg0: i32) -> (i32, i32, i32) {
    %c0_i32 = arith.constant 0 : i32
    %c0_i32_0 = arith.constant 0 : i32
    %c0_i32_1 = arith.constant 0 : i32
    return %arg0, %c0_i32, %c0_i32_0 : i32, i32, i32
  }
  func.func @transform_1(%arg0: i32) -> (i32, i32) {
    %c0_i32 = arith.constant 0 : i32
    %c0_i32_0 = arith.constant 0 : i32
    %c0_i32_1 = arith.constant 0 : i32
    return %c0_i32, %c0_i32_0 : i32, i32
  }
  func.func @transform_2(%arg0: i32) -> (i32, i32) {
    %c0_i32 = arith.constant 0 : i32
    %c0_i32_0 = arith.constant 0 : i32
    %c0_i32_1 = arith.constant 0 : i32
    return %c0_i32, %c0_i32_0 : i32, i32
  }
  func.func @transform_3(%arg0: i32) -> (i32, i32) {
    %c0_i32 = arith.constant 0 : i32
    %c0_i32_0 = arith.constant 0 : i32
    %c0_i32_1 = arith.constant 0 : i32
    return %c0_i32, %c0_i32_0 : i32, i32
  }
  func.func @transform_4(%arg0: i32) -> (i32, i32) {
    %c0_i32 = arith.constant 0 : i32
    %c0_i32_0 = arith.constant 0 : i32
    return %arg0, %c0_i32 : i32, i32
  }
  func.func @transform_5(%arg0: i32) -> (i32, i32) {
    %c0_i32 = arith.constant 0 : i32
    %c0_i32_0 = arith.constant 0 : i32
    return %arg0, %c0_i32 : i32, i32
  }
}

</mosaic_0001>

<bundles_post_ra>
// kernel: tpu_custom_call.1
= control target key start
LH: loop header
LB: loop body
LE: loop exit
PB: predicated region body
PF: predicated region fallthrough
CT: control target
= control target key end

     0   :  { %vm440_vm0 = vcmask 1041409   ;;  %vm442_vm1 = vcmask 1042434   ;;  %vm444_vm2 = vcmask 1043459   ;;  %vm446_vm3 = vcmask 1044484   ;;  %s1141_s0 = inlined_call_operand.vmem [shape: f32[8,16,512], index: 0, kind: input, shape index: {}]   ;;  %s1142_s1 = inlined_call_operand.vmem [shape: f32[512,12], index: 1, kind: input, shape index: {}]   ;;  %s1143_s2 = inlined_call_operand.vmem [shape: f32[1,12], index: 2, kind: input, shape index: {}]   ;;  %s1144_s3 = inlined_call_operand.vmem [shape: f32[3,9], index: 3, kind: input, shape index: {}]   ;;  %s1145_s4 = inlined_call_operand.hbm [shape: f32[8,9], index: 4, kind: output, shape index: {0}]   ;;  %s1146_s5 = inlined_call_operand.vmem [shape: f32[8,3], index: 5, kind: output, shape index: {1}]  }
   0x1   :  { %v387_v0 = vld [vmem:[%s1142_s1 + $0x178] sm:$0xff]  ;;  %v386_v2 = vld [vmem:[%s1142_s1 + $0x170] sm:$0xff]  ;;  %v385_v6 = vld [vmem:[%s1142_s1 + $0x168] sm:$0xff]  ;;  %vm448_vm4 = vcmask 1045509   ;;  %vm450_vm5 = vcmask 1046534   ;;  %vm452_vm6 = vcmask 1047559  }
   0x2   :  { %v355_v1 = vld [vmem:[%s1142_s1 + $0x78] sm:$0xff]  ;;  %519 = vmatpush.msra.mxu2 %v387_v0  ;;  %v354_v4 = vld [vmem:[%s1142_s1 + $0x70] sm:$0xff]  ;;  %v353_v8 = vld [vmem:[%s1142_s1 + $0x68] sm:$0xff] }
   0x3   :  { %479 = vmatpush.msra.mxu0 %v355_v1  ;;  %v403_v3 = vld [vmem:[%s1142_s1 + $0x1f8] sm:$0xff]  ;;  %v402_v7 = vld [vmem:[%s1142_s1 + $0x1f0] sm:$0xff]  ;;  %v401_v10 = vld [vmem:[%s1142_s1 + $0x1e8] sm:$0xff] }
   0x4   :  { %v371_v5 = vld [vmem:[%s1142_s1 + $0xf8] sm:$0xff]  ;;  %539 = vmatpush.msra.mxu3 %v403_v3  ;;  %520 = vmatpush.msra.mxu2 %v386_v2  ;;  %v370_v9 = vld [vmem:[%s1142_s1 + $0xf0] sm:$0xff]  ;;  %v384_v11 = vld [vmem:[%s1142_s1 + $0x160] sm:$0xff] }
   0x5   :  { %499 = vmatpush.msra.mxu1 %v371_v5  ;;  %480 = vmatpush.msra.mxu0 %v354_v4  ;;  %v352_v12 = vld [vmem:[%s1142_s1 + $0x60] sm:$0xff]  ;;  %v369_v13 = vld [vmem:[%s1142_s1 + $0xe8] sm:$0xff]  ;;  %v383_v16 = vld [vmem:[%s1142_s1 + $0x158] sm:$0xff] }
   0x6   :  { %540 = vmatpush.msra.mxu3 %v402_v7  ;;  %521 = vmatpush.msra.mxu2 %v385_v6  ;;  %v400_v14 = vld [vmem:[%s1142_s1 + $0x1e0] sm:$0xff]  ;;  %v351_v17 = vld [vmem:[%s1142_s1 + $0x58] sm:$0xff]  ;;  %v382_v20 = vld [vmem:[%s1142_s1 + $0x150] sm:$0xff] }
   0x7   :  { %500 = vmatpush.msra.mxu1 %v370_v9  ;;  %481 = vmatpush.msra.mxu0 %v353_v8  ;;  %v368_v15 = vld [vmem:[%s1142_s1 + $0xe0] sm:$0xff]  ;;  %v399_v18 = vld [vmem:[%s1142_s1 + $0x1d8] sm:$0xff]  ;;  %v350_v21 = vld [vmem:[%s1142_s1 + $0x50] sm:$0xff] }
   0x8   :  { %541 = vmatpush.msra.mxu3 %v401_v10  ;;  %522 = vmatpush.msra.mxu2 %v384_v11  ;;  %v367_v19 = vld [vmem:[%s1142_s1 + $0xd8] sm:$0xff]  ;;  %v398_v22 = vld [vmem:[%s1142_s1 + $0x1d0] sm:$0xff]  ;;  %v381_v24 = vld [vmem:[%s1142_s1 + $0x148] sm:$0xff] }
   0x9   :  { %501 = vmatpush.msra.mxu1 %v369_v13  ;;  %482 = vmatpush.msra.mxu0 %v352_v12  ;;  %v366_v23 = vld [vmem:[%s1142_s1 + $0xd0] sm:$0xff]  ;;  %v349_v25 = vld [vmem:[%s1142_s1 + $0x48] sm:$0xff]  ;;  %v380_v28 = vld [vmem:[%s1142_s1 + $0x140] sm:$0xff] }
   0xa   :  { %542 = vmatpush.msra.mxu3 %v400_v14  ;;  %523 = vmatpush.msra.mxu2 %v383_v16  ;;  %v397_v26 = vld [vmem:[%s1142_s1 + $0x1c8] sm:$0xff]  ;;  %v348_v29 = vld [vmem:[%s1142_s1 + $0x40] sm:$0xff]  ;;  %v379_v32 = vld [vmem:[%s1142_s1 + $0x138] sm:$0xff] }
   0xb   :  { %502 = vmatpush.msra.mxu1 %v368_v15  ;;  %483 = vmatpush.msra.mxu0 %v351_v17  ;;  %v365_v27 = vld [vmem:[%s1142_s1 + $0xc8] sm:$0xff]  ;;  %v396_v30 = vld [vmem:[%s1142_s1 + $0x1c0] sm:$0xff]  ;;  %v347_v33 = vld [vmem:[%s1142_s1 + $0x38] sm:$0xff] }
   0xc   :  { %543 = vmatpush.msra.mxu3 %v399_v18  ;;  %524 = vmatpush.msra.mxu2 %v382_v20  ;;  %v364_v31 = vld [vmem:[%s1142_s1 + $0xc0] sm:$0xff]  ;;  %v395_v34 = vld [vmem:[%s1142_s1 + $0x1b8] sm:$0xff]  ;;  %v378_v36 = vld [vmem:[%s1142_s1 + $0x130] sm:$0xff] }
   0xd   :  { %503 = vmatpush.msra.mxu1 %v367_v19  ;;  %484 = vmatpush.msra.mxu0 %v350_v21  ;;  %v363_v35 = vld [vmem:[%s1142_s1 + $0xb8] sm:$0xff]  ;;  %v346_v37 = vld [vmem:[%s1142_s1 + $0x30] sm:$0xff]  ;;  %v377_v38 = vld [vmem:[%s1142_s1 + $0x128] sm:$0xff] }
   0xe   :  { %544 = vmatpush.msra.mxu3 %v398_v22  ;;  %525 = vmatpush.msra.mxu2 %v381_v24  ;;  %v394_v39 = vld [vmem:[%s1142_s1 + $0x1b0] sm:$0xff]  ;;  %v345_v40 = vld [vmem:[%s1142_s1 + $0x28] sm:$0xff]  ;;  %v376_v42 = vld [vmem:[%s1142_s1 + $0x120] sm:$0xff] }
   0xf   :  { %504 = vmatpush.msra.mxu1 %v366_v23  ;;  %485 = vmatpush.msra.mxu0 %v349_v25  ;;  %v362_v41 = vld [vmem:[%s1142_s1 + $0xb0] sm:$0xff]  ;;  %v393_v43 = vld [vmem:[%s1142_s1 + $0x1a8] sm:$0xff]  ;;  %v344_v44 = vld [vmem:[%s1142_s1 + $0x20] sm:$0xff] }
  0x10   :  { %545 = vmatpush.msra.mxu3 %v397_v26  ;;  %526 = vmatpush.msra.mxu2 %v380_v28  ;;  %v361_v45 = vld [vmem:[%s1142_s1 + $0xa8] sm:$0xff]  ;;  %v392_v46 = vld [vmem:[%s1142_s1 + $0x1a0] sm:$0xff]  ;;  %v375_v48 = vld [vmem:[%s1142_s1 + $0x118] sm:$0xff] }
  0x11   :  { %505 = vmatpush.msra.mxu1 %v365_v27  ;;  %486 = vmatpush.msra.mxu0 %v348_v29  ;;  %v360_v47 = vld [vmem:[%s1142_s1 + $0xa0] sm:$0xff]  ;;  %v343_v49 = vld [vmem:[%s1142_s1 + $0x18] sm:$0xff]  ;;  %v22_v50 = vld [vmem:[%s1141_s0 + $0x10] sm:$0xff] }
  0x12   :  { %546 = vmatpush.msra.mxu3 %v396_v30  ;;  %527 = vmatpush.msra.mxu2 %v379_v32  ;;  %v26_v51 = vld [vmem:[%s1141_s0 + $0x30] sm:$0xff]  ;;  %v391_v53 = vld [vmem:[%s1142_s1 + $0x198] sm:$0xff]  ;;  %v373_v20 = vld [vmem:[%s1142_s1 + $0x108] sm:$0xff] }
  0x13   :  { %506 = vmatpush.msra.mxu1 %v364_v31  ;;  %487 = vmatpush.msra.mxu0 %v347_v33  ;;  %v30_v52 = vld [vmem:[%s1141_s0 + $0x50] sm:$0xff]  ;;  %v359_v54 = vld [vmem:[%s1142_s1 + $0x98] sm:$0xff]  ;;  %v98_v58 = vadd.f32 %v26_v51, %v22_v50  ;;  %v341_v21 = vld [vmem:[%s1142_s1 + $0x8] sm:$0xff] }
  0x14   :  { %547 = vmatpush.msra.mxu3 %v395_v34  ;;  %528 = vmatpush.msra.mxu2 %v378_v36  ;;  %v34_v55 = vld [vmem:[%s1141_s0 + $0x70] sm:$0xff]  ;;  %v389_v26 = vld [vmem:[%s1142_s1 + $0x188] sm:$0xff]  ;;  %v372_v32 = vld [vmem:[%s1142_s1 + $0x100] sm:$0xff] }
  0x15   :  { %507 = vmatpush.msra.mxu1 %v363_v35  ;;  %488 = vmatpush.msra.mxu0 %v346_v37  ;;  %v38_v56 = vld [vmem:[%s1141_s0 + $0x90] sm:$0xff]  ;;  %v126_v0 = vadd.f32 %v34_v55, %v30_v52  ;;  %v99_v5 = vrot.slane %v98_v58, 4  ;;  %v357_v31 = vld [vmem:[%s1142_s1 + $0x88] sm:$0xff]  ;;  %v340_v37 = vld [vmem:[%s1142_s1] sm:$0xff] }
  0x16   :  { %548 = vmatpush.msra.mxu3 %v394_v39  ;;  %529 = vmatpush.msra.mxu2 %v377_v38  ;;  %v42_v57 = vld [vmem:[%s1141_s0 + $0xb0] sm:$0xff] }
  0x17   :  { %508 = vmatpush.msra.mxu1 %v362_v41  ;;  %489 = vmatpush.msra.mxu0 %v345_v40  ;;  %v374_v59 = vld [vmem:[%s1142_s1 + $0x110] sm:$0xff]  ;;  %v154_v1 = vadd.f32 %v42_v57, %v38_v56  ;;  %v127_v10 = vrot.slane %v126_v0, 4  ;;  %v100_v17 = vadd.f32 %v99_v5, %v98_v58  ;;  %v28_v5 = vld [vmem:[%s1141_s0 + $0x40] sm:$0xff] }
  0x18   :  { %549 = vmatpush.msra.mxu3 %v393_v43  ;;  %v342_v60 = vld [vmem:[%s1142_s1 + $0x10] sm:$0xff]  ;;  %530 = vmatpush.msra.mxu2 %v376_v42  ;;  %v388_v42 = vld [vmem:[%s1142_s1 + $0x180] sm:$0xff] }
  0x19   :  { %509 = vmatpush.msra.mxu1 %v361_v45  ;;  %v46_v61 = vld [vmem:[%s1141_s0 + $0xd0] sm:$0xff]  ;;  %490 = vmatpush.msra.mxu0 %v344_v44  ;;  %v155_v11 = vrot.slane %v154_v1, 4  ;;  %v128_v22 = vadd.f32 %v127_v10, %v126_v0  ;;  %v101_v27 = vrot.slane %v100_v17, 2  ;;  %v24_v0 = vld [vmem:[%s1141_s0 + $0x20] sm:$0xff] }
  0x1a   :  { %v50_v62 = vld [vmem:[%s1141_s0 + $0xf0] sm:$0xff]  ;;  %550 = vmatpush.msra.mxu3 %v392_v46  ;;  %531 = vmatpush.msra.mxu2 %v375_v48 }
  0x1b   :  { %v54_v63 = vld [vmem:[%s1141_s0 + $0x110] sm:$0xff]  ;;  %v182_v6 = vadd.f32 %v50_v62, %v46_v61  ;;  %510 = vmatpush.msra.mxu1 %v360_v47  ;;  %491 = vmatpush.msra.mxu0 %v343_v49  ;;  %v156_v23 = vadd.f32 %v155_v11, %v154_v1  ;;  %v129_v33 = vrot.slane %v128_v22, 2  ;;  %v102_v38 = vadd.f32 %v101_v27, %v100_v17  ;;  %v36_v11 = vld [vmem:[%s1141_s0 + $0x80] sm:$0xff] }
  0x1c   :  { %v58_v2 = vld [vmem:[%s1141_s0 + $0x130] sm:$0xff]  ;;  %551 = vmatpush.msra.mxu3 %v391_v53  ;;  %532 = vmatpush.msra.mxu2 %v374_v59  ;;  %v48_v17 = vld [vmem:[%s1141_s0 + $0xe0] sm:$0xff] }
  0x1d   :  { %v62_v3 = vld [vmem:[%s1141_s0 + $0x150] sm:$0xff]  ;;  %v210_v12 = vadd.f32 %v58_v2, %v54_v63  ;;  %v183_v18 = vrot.slane %v182_v6, 4  ;;  %511 = vmatpush.msra.mxu1 %v359_v54  ;;  %492 = vmatpush.msra.mxu0 %v342_v60  ;;  %v157_v34 = vrot.slane %v156_v23, 2  ;;  %v130_v43 = vadd.f32 %v129_v33, %v128_v22  ;;  %v20_v63 = vld [vmem:[%s1141_s0] sm:$0xff] }
  0x1e   :  { %v66_v4 = vld [vmem:[%s1141_s0 + $0x170] sm:$0xff]  ;;  %533 = vmatpush.msra.mxu2 %v373_v20  ;;  %v103_v47 = vrot.slane %v102_v38, 1  ;;  %v52_v22 = vld [vmem:[%s1141_s0 + $0x100] sm:$0xff] }
  0x1f   :  { %v70_v7 = vld [vmem:[%s1141_s0 + $0x190] sm:$0xff]  ;;  %v238_v13 = vadd.f32 %v66_v4, %v62_v3  ;;  %v211_v24 = vrot.slane %v210_v12, 4  ;;  %v184_v28 = vadd.f32 %v183_v18, %v182_v6  ;;  %493 = vmatpush.msra.mxu0 %v341_v21  ;;  %v158_v44 = vadd.f32 %v157_v34, %v156_v23  ;;  %v32_v6 = vld [vmem:[%s1141_s0 + $0x60] sm:$0xff] }
  0x20   :  { %v74_v8 = vld [vmem:[%s1141_s0 + $0x1b0] sm:$0xff]  ;;  %534 = vmatpush.msra.mxu2 %v372_v32  ;;  %v131_v51 = vrot.slane %v130_v43, 1  ;;  %v104_v55 = vadd.f32 %v103_v47, %v102_v38  ;;  %v84_v18 = vadd.f32 %v24_v0, %v20_v63  ;;  %v56_v23 = vld [vmem:[%s1141_s0 + $0x120] sm:$0xff] }
  0x21   :  { %v78_v9 = vld [vmem:[%s1141_s0 + $0x1d0] sm:$0xff]  ;;  %v266_v19 = vadd.f32 %v74_v8, %v70_v7  ;;  %v239_v25 = vrot.slane %v238_v13, 4  ;;  %v212_v35 = vadd.f32 %v211_v24, %v210_v12  ;;  %v185_v39 = vrot.slane %v184_v28, 2  ;;  %494 = vmatpush.msra.mxu0 %v340_v37  ;;  %v80_v47 = vld [vmem:[%s1141_s0 + $0x1e0] sm:$0xff] }
  0x22   :  { %v390_v14 = vld [vmem:[%s1142_s1 + $0x190] sm:$0xff]  ;;  %v159_v52 = vrot.slane %v158_v44, 1  ;;  %v132_v59 = vadd.f32 %v131_v51, %v130_v43  ;;  %v310_v4 = vmul.f32 0.0625, %v104_v55  ;;  %v112_v24 = vadd.f32 %v32_v6, %v28_v5 }
  0x23   :  { %v358_v15 = vld [vmem:[%s1142_s1 + $0x90] sm:$0xff]  ;;  %v267_v29 = vrot.slane %v266_v19, 4  ;;  %552 = vmatpush.msra.mxu3 %v390_v14  ;;  %v240_v36 = vadd.f32 %v239_v25, %v238_v13  ;;  %v213_v45 = vrot.slane %v212_v35, 2  ;;  %v186_v48 = vadd.f32 %v185_v39, %v184_v28 }
  0x24   :  { %v82_v16 = vld [vmem:[%s1141_s0 + $0x1f0] sm:$0xff]  ;;  %512 = vmatpush.msra.mxu1 %v358_v15  ;;  %v160_v60 = vadd.f32 %v159_v52, %v158_v44  ;;  %v40_v15 = vld [vmem:[%s1141_s0 + $0xa0] sm:$0xff]  ;;  %v85_v28 = vrot.slane %v84_v18, 4  ;;  %v113_v32 = vrot.slane %v112_v24, 4  ;;  %v196_v38 = vadd.f32 %v56_v23, %v52_v22 }
  0x25   :  { %v294_v30 = vadd.f32 %v82_v16, %v78_v9  ;;  %v268_v40 = vadd.f32 %v267_v29, %v266_v19  ;;  %553 = vmatpush.msra.mxu3 %v389_v26  ;;  %v241_v46 = vrot.slane %v240_v36, 2  ;;  %v214_v53 = vadd.f32 %v213_v45, %v212_v35  ;;  %v44_v16 = vld [vmem:[%s1141_s0 + $0xc0] sm:$0xff] }
  0x26   :  { %513 = vmatpush.msra.mxu1 %v357_v31  ;;  %v187_v56 = vrot.slane %v186_v48, 1  ;;  %v314_v9 = vmul.f32 0.0625, %v132_v59  ;;  %v318_v10 = vmul.f32 0.0625, %v160_v60  ;;  %v64_v31 = vld [vmem:[%s1141_s0 + $0x160] sm:$0xff]  ;;  %v140_v33 = vadd.f32 %v40_v15, %v36_v11 }
  0x27   :  { %v295_v41 = vrot.slane %v294_v30, 4  ;;  %v269_v49 = vrot.slane %v268_v40, 2  ;;  %v242_v54 = vadd.f32 %v241_v46, %v240_v36  ;;  %554 = vmatpush.msra.mxu3 %v388_v42  ;;  %v215_v61 = vrot.slane %v214_v53, 1  ;;  %v76_v46 = vld [vmem:[%s1141_s0 + $0x1c0] sm:$0xff] }
  0x28   :  { %v188_v1 = vadd.f32 %v187_v56, %v186_v48  ;;  %v461_v21 = vsel %vm440_vm0, %v314_v9, %v310_v4  ;;  %v168_v34 = vadd.f32 %v48_v17, %v44_v16  ;;  %v86_v37 = vadd.f32 %v85_v28, %v84_v18 }
  0x29   :  { %v296_v50 = vadd.f32 %v295_v41, %v294_v30  ;;  %v270_v57 = vadd.f32 %v269_v49, %v268_v40  ;;  %v243_v62 = vrot.slane %v242_v54, 1  ;;  %v216_v7 = vadd.f32 %v215_v61, %v214_v53  ;;  %v60_v30 = vld [vmem:[%s1141_s0 + $0x140] sm:$0xff] }
  0x2a   :  { %v322_v14 = vmul.f32 0.0625, %v188_v1  ;;  %v462_v27 = vsel %vm442_vm1, %v318_v10, %v461_v21  ;;  %v68_v40 = vld [vmem:[%s1141_s0 + $0x180] sm:$0xff]  ;;  %v114_v42 = vadd.f32 %v113_v32, %v112_v24  ;;  %v141_v43 = vrot.slane %v140_v33, 4 }
  0x2b   :  { %v297_v58 = vrot.slane %v296_v50, 2  ;;  %v271_v2 = vrot.slane %v270_v57, 1  ;;  %v244_v8 = vadd.f32 %v243_v62, %v242_v54  ;;  %v326_v19 = vmul.f32 0.0625, %v216_v7  ;;  %v72_v41 = vld [vmem:[%s1141_s0 + $0x1a0] sm:$0xff] }
  0x2c   :  { %v463_v29 = vsel %vm444_vm2, %v322_v14, %v462_v27  ;;  %v169_v44 = vrot.slane %v168_v34, 4  ;;  %v87_v48 = vrot.slane %v86_v37, 2  ;;  %v197_v49 = vrot.slane %v196_v38, 4 }
  0x2d   :  { %v298_v3 = vadd.f32 %v297_v58, %v296_v50  ;;  %v272_v12 = vadd.f32 %v271_v2, %v270_v57  ;;  %v330_v20 = vmul.f32 0.0625, %v244_v8  ;;  %v464_v36 = vsel %vm446_vm3, %v326_v19, %v463_v29 }
  0x2e   :  { %v224_v50 = vadd.f32 %v64_v31, %v60_v30 }
  0x2f   :  { %v299_v13 = vrot.slane %v298_v3, 1  ;;  %v334_v26 = vmul.f32 0.0625, %v272_v12  ;;  %v465_v39 = vsel %vm448_vm4, %v330_v20, %v464_v36 }
  0x31   :  { %v300_v25 = vadd.f32 %v299_v13, %v298_v3  ;;  %v466_v45 = vsel %vm450_vm5, %v334_v26, %v465_v39 }
  0x33   :  { %v338_v35 = vmul.f32 0.0625, %v300_v25 }
  0x34   :  { %11 = vsyncpa [#allocation3], 0  ;;  %v115_v52 = vrot.slane %v114_v42, 2  ;;  %v142_v53 = vadd.f32 %v141_v43, %v140_v33  ;;  %v170_v54 = vadd.f32 %v169_v44, %v168_v34  ;;  %v88_v55 = vadd.f32 %v87_v48, %v86_v37  ;;  %v356_v11 = vld [vmem:[%s1142_s1 + $0x80] sm:$0xff]  ;;  %v23_v16 = vld [vmem:[%s1141_s0 + $0x18] sm:$0xff]  ;;  %s682_s25 = smov [#allocation2]  }
  0x35   :  { %v467_v51 = vsel %vm452_vm6, %v338_v35, %v466_v45  ;;  %v198_v56 = vadd.f32 %v197_v49, %v196_v38  ;;  %v225_v57 = vrot.slane %v224_v50, 4  ;;  %v252_v58 = vadd.f32 %v72_v41, %v68_v40  ;;  %v27_v17 = vld [vmem:[%s1141_s0 + $0x38] sm:$0xff]  ;;  %514 = vmatpush.msra.mxu1 %v356_v11  ;;  %s629_s26 = sshll.u32 %s682_s25, 4  ;;  %s631_s29 = sshll.u32 %s1145_s4, 4  ;;  %s630_s26 = int_to_ptr.vmem [resolvable:$true] %s629_s26  ;;  %s632_s29 = int_to_ptr.hbm [resolvable:$true] %s631_s29 }
  0x36   :  { %535 = vmatmul.f32.vlgmr.msra.gmra.mxu2 %v467_v51  ;;  %v116_v59 = vadd.f32 %v115_v52, %v114_v42  ;;  %v143_v60 = vrot.slane %v142_v53, 2  ;;  %v171_v61 = vrot.slane %v170_v54, 2  ;;  %v280_v62 = vadd.f32 %v80_v47, %v76_v46  ;;  %v31_v26 = vld [vmem:[%s1141_s0 + $0x58] sm:$0xff] }
  0x37   :  { %v89_v63 = vrot.slane %v88_v55, 1  ;;  %v199_v0 = vrot.slane %v198_v56, 2  ;;  %v226_v1 = vadd.f32 %v225_v57, %v224_v50  ;;  %v253_v2 = vrot.slane %v252_v58, 4  ;;  %v35_v30 = vld [vmem:[%s1141_s0 + $0x78] sm:$0xff] }
  0x38   :  { %v117_v3 = vrot.slane %v116_v59, 1  ;;  %v144_v4 = vadd.f32 %v143_v60, %v142_v53  ;;  %v172_v5 = vadd.f32 %v171_v61, %v170_v54  ;;  %v281_v6 = vrot.slane %v280_v62, 4  ;;  %v39_v31 = vld [vmem:[%s1141_s0 + $0x98] sm:$0xff] }
  0x39   :  { %v90_v7 = vadd.f32 %v89_v63, %v88_v55  ;;  %v200_v8 = vadd.f32 %v199_v0, %v198_v56  ;;  %v227_v9 = vrot.slane %v226_v1, 2  ;;  %v254_v10 = vadd.f32 %v253_v2, %v252_v58  ;;  %v43_v32 = vld [vmem:[%s1141_s0 + $0xb8] sm:$0xff] }
  0x3a   :  { %v118_v12 = vadd.f32 %v117_v3, %v116_v59  ;;  %v145_v13 = vrot.slane %v144_v4, 1  ;;  %v173_v14 = vrot.slane %v172_v5, 1  ;;  %v282_v15 = vadd.f32 %v281_v6, %v280_v62  ;;  %v47_v44 = vld [vmem:[%s1141_s0 + $0xd8] sm:$0xff] }
  0x3b   :  { %v201_v18 = vrot.slane %v200_v8, 1  ;;  %v228_v19 = vadd.f32 %v227_v9, %v226_v1  ;;  %v255_v20 = vrot.slane %v254_v10, 2  ;;  %v308_v21 = vmul.f32 0.0625, %v90_v7  ;;  %v51_v45 = vld [vmem:[%s1141_s0 + $0xf8] sm:$0xff] }
  0x3c   :  { %v146_v22 = vadd.f32 %v145_v13, %v144_v4  ;;  %v174_v23 = vadd.f32 %v173_v14, %v172_v5  ;;  %v283_v24 = vrot.slane %v282_v15, 2  ;;  %v312_v25 = vmul.f32 0.0625, %v118_v12  ;;  %v55_v51 = vld [vmem:[%s1141_s0 + $0x118] sm:$0xff] }
  0x3d   :  { %v202_v27 = vadd.f32 %v201_v18, %v200_v8  ;;  %v229_v28 = vrot.slane %v228_v19, 1  ;;  %v256_v29 = vadd.f32 %v255_v20, %v254_v10  ;;  %v105_v33 = vadd.f32 %v27_v17, %v23_v16  ;;  %v59_v52 = vld [vmem:[%s1141_s0 + $0x138] sm:$0xff] }
  0x3e   :  { %v284_v34 = vadd.f32 %v283_v24, %v282_v15  ;;  %v316_v35 = vmul.f32 0.0625, %v146_v22  ;;  %v320_v36 = vmul.f32 0.0625, %v174_v23  ;;  %v441_v37 = vsel %vm440_vm0, %v312_v25, %v308_v21  ;;  %v63_v56 = vld [vmem:[%s1141_s0 + $0x158] sm:$0xff] }
  0x3f   :  { %v230_v38 = vadd.f32 %v229_v28, %v228_v19  ;;  %v257_v39 = vrot.slane %v256_v29, 1  ;;  %v324_v40 = vmul.f32 0.0625, %v202_v27  ;;  %v106_v41 = vrot.slane %v105_v33, 4  ;;  %v67_v57 = vld [vmem:[%s1141_s0 + $0x178] sm:$0xff] }
  0x40   :  { %v285_v42 = vrot.slane %v284_v34, 1  ;;  %v443_v43 = vsel %vm442_vm1, %v316_v35, %v441_v37  ;;  %v133_v46 = vadd.f32 %v35_v30, %v31_v26  ;;  %v161_v47 = vadd.f32 %v43_v32, %v39_v31  ;;  %v71_v1 = vld [vmem:[%s1141_s0 + $0x198] sm:$0xff]  ;;  %v21_v32 = vld [vmem:[%s1141_s0 + $0x8] sm:$0xff] }
  0x41   :  { %v258_v48 = vadd.f32 %v257_v39, %v256_v29  ;;  %v328_v49 = vmul.f32 0.0625, %v230_v38  ;;  %v445_v50 = vsel %vm444_vm2, %v320_v36, %v443_v43  ;;  %v107_v53 = vadd.f32 %v106_v41, %v105_v33  ;;  %v75_v2 = vld [vmem:[%s1141_s0 + $0x1b8] sm:$0xff]  ;;  %v25_v33 = vld [vmem:[%s1141_s0 + $0x28] sm:$0xff] }
  0x42   :  { %v286_v54 = vadd.f32 %v285_v42, %v284_v34  ;;  %v447_v55 = vsel %vm446_vm3, %v324_v40, %v445_v50  ;;  %v134_v58 = vrot.slane %v133_v46, 4  ;;  %v162_v59 = vrot.slane %v161_v47, 4  ;;  %v79_v7 = vld [vmem:[%s1141_s0 + $0x1d8] sm:$0xff] }
  0x43   :  { %v332_v60 = vmul.f32 0.0625, %v258_v48  ;;  %v449_v61 = vsel %vm448_vm4, %v328_v49, %v447_v55  ;;  %v108_v62 = vrot.slane %v107_v53, 2  ;;  %v189_v63 = vadd.f32 %v51_v45, %v47_v44  ;;  %v83_v8 = vld [vmem:[%s1141_s0 + $0x1f8] sm:$0xff]  ;;  %v29_v45 = vld [vmem:[%s1141_s0 + $0x48] sm:$0xff] }
  0x44   :  { %v336_v0 = vmul.f32 0.0625, %v286_v54  ;;  %v135_v3 = vadd.f32 %v134_v58, %v133_v46  ;;  %v163_v4 = vadd.f32 %v162_v59, %v161_v47  ;;  %v217_v5 = vadd.f32 %v59_v52, %v55_v51  ;;  %v33_v46 = vld [vmem:[%s1141_s0 + $0x68] sm:$0xff] }
  0x45   :  { %v451_v6 = vsel %vm450_vm5, %v332_v60, %v449_v61  ;;  %v109_v9 = vadd.f32 %v108_v62, %v107_v53  ;;  %v190_v10 = vrot.slane %v189_v63, 4  ;;  %v245_v11 = vadd.f32 %v67_v57, %v63_v56  ;;  %v37_v59 = vld [vmem:[%s1141_s0 + $0x88] sm:$0xff] }
  0x46   :  { %v453_v12 = vsel %vm452_vm6, %v336_v0, %v451_v6  ;;  %v136_v13 = vrot.slane %v135_v3, 2  ;;  %v164_v14 = vrot.slane %v163_v4, 2  ;;  %v218_v15 = vrot.slane %v217_v5, 4  ;;  %v41_v60 = vld [vmem:[%s1141_s0 + $0xa8] sm:$0xff] }
  0x47   :  { %495 = vmatmul.f32.vlgmr.msra.gmra.mxu0 %v453_v12  ;;  %v110_v16 = vrot.slane %v109_v9, 1  ;;  %v191_v17 = vadd.f32 %v190_v10, %v189_v63  ;;  %v246_v18 = vrot.slane %v245_v11, 4  ;;  %v273_v19 = vadd.f32 %v75_v2, %v71_v1  ;;  %v57_v12 = vld [vmem:[%s1141_s0 + $0x128] sm:$0xff] }
  0x48   :  { %v137_v20 = vadd.f32 %v136_v13, %v135_v3  ;;  %v165_v21 = vadd.f32 %v164_v14, %v163_v4  ;;  %v219_v22 = vadd.f32 %v218_v15, %v217_v5  ;;  %v301_v23 = vadd.f32 %v83_v8, %v79_v7  ;;  %v45_v4 = vld [vmem:[%s1141_s0 + $0xc8] sm:$0xff] }
  0x49   :  { %v111_v24 = vadd.f32 %v110_v16, %v109_v9  ;;  %v192_v25 = vrot.slane %v191_v17, 2  ;;  %v247_v26 = vadd.f32 %v246_v18, %v245_v11  ;;  %v274_v27 = vrot.slane %v273_v19, 4  ;;  %v49_v5 = vld [vmem:[%s1141_s0 + $0xe8] sm:$0xff] }
  0x4a   :  { %v138_v28 = vrot.slane %v137_v20, 1  ;;  %v166_v29 = vrot.slane %v165_v21, 1  ;;  %v220_v30 = vrot.slane %v219_v22, 2  ;;  %v302_v31 = vrot.slane %v301_v23, 4  ;;  %v53_v11 = vld [vmem:[%s1141_s0 + $0x108] sm:$0xff] }
  0x4b   :  { %v193_v34 = vadd.f32 %v192_v25, %v191_v17  ;;  %v248_v35 = vrot.slane %v247_v26, 2  ;;  %v275_v36 = vadd.f32 %v274_v27, %v273_v19  ;;  %v311_v37 = vmul.f32 0.0625, %v111_v24  ;;  %v61_v16 = vld [vmem:[%s1141_s0 + $0x148] sm:$0xff] }
  0x4c   :  { %v139_v38 = vadd.f32 %v138_v28, %v137_v20  ;;  %v167_v39 = vadd.f32 %v166_v29, %v165_v21  ;;  %v221_v40 = vadd.f32 %v220_v30, %v219_v22  ;;  %v303_v41 = vadd.f32 %v302_v31, %v301_v23  ;;  %v65_v17 = vld [vmem:[%s1141_s0 + $0x168] sm:$0xff] }
  0x4d   :  { %v194_v42 = vrot.slane %v193_v34, 1  ;;  %v249_v43 = vadd.f32 %v248_v35, %v247_v26  ;;  %v276_v44 = vrot.slane %v275_v36, 2  ;;  %v91_v47 = vadd.f32 %v25_v33, %v21_v32  ;;  %v69_v25 = vld [vmem:[%s1141_s0 + $0x188] sm:$0xff] }
  0x4e   :  { %v222_v48 = vrot.slane %v221_v40, 1  ;;  %v304_v49 = vrot.slane %v303_v41, 2  ;;  %v315_v50 = vmul.f32 0.0625, %v139_v38  ;;  %v319_v51 = vmul.f32 0.0625, %v167_v39  ;;  %v73_v26 = vld [vmem:[%s1141_s0 + $0x1a8] sm:$0xff] }
  0x4f   :  { %v195_v52 = vadd.f32 %v194_v42, %v193_v34  ;;  %v250_v53 = vrot.slane %v249_v43, 1  ;;  %v277_v54 = vadd.f32 %v276_v44, %v275_v36  ;;  %v92_v55 = vrot.slane %v91_v47, 4  ;;  %v77_v31 = vld [vmem:[%s1141_s0 + $0x1c8] sm:$0xff] }
  0x50   :  { %v223_v56 = vadd.f32 %v222_v48, %v221_v40  ;;  %v305_v57 = vadd.f32 %v304_v49, %v303_v41  ;;  %v468_v58 = vsel %vm440_vm0, %v315_v50, %v311_v37  ;;  %v119_v61 = vadd.f32 %v33_v46, %v29_v45  ;;  %v81_v32 = vld [vmem:[%s1141_s0 + $0x1e8] sm:$0xff] }
  0x51   :  { %v251_v62 = vadd.f32 %v250_v53, %v249_v43  ;;  %v278_v63 = vrot.slane %v277_v54, 1  ;;  %v323_v0 = vmul.f32 0.0625, %v195_v52  ;;  %v469_v1 = vsel %vm442_vm1, %v319_v51, %v468_v58 }
  0x52   :  { %v306_v2 = vrot.slane %v305_v57, 1  ;;  %v327_v3 = vmul.f32 0.0625, %v223_v56  ;;  %v93_v6 = vadd.f32 %v92_v55, %v91_v47  ;;  %v120_v7 = vrot.slane %v119_v61, 4 }
  0x53   :  { %v279_v8 = vadd.f32 %v278_v63, %v277_v54  ;;  %v331_v9 = vmul.f32 0.0625, %v251_v62  ;;  %v470_v10 = vsel %vm444_vm2, %v323_v0, %v469_v1  ;;  %v147_v13 = vadd.f32 %v41_v60, %v37_v59 }
  0x54   :  { %v307_v14 = vadd.f32 %v306_v2, %v305_v57  ;;  %v471_v15 = vsel %vm446_vm3, %v327_v3, %v470_v10  ;;  %v94_v18 = vrot.slane %v93_v6, 2  ;;  %v121_v19 = vadd.f32 %v120_v7, %v119_v61 }
  0x55   :  { %v335_v20 = vmul.f32 0.0625, %v279_v8  ;;  %v472_v21 = vsel %vm448_vm4, %v331_v9, %v471_v15  ;;  %v148_v22 = vrot.slane %v147_v13, 4  ;;  %v175_v23 = vadd.f32 %v49_v5, %v45_v4 }
  0x56   :  { %v339_v24 = vmul.f32 0.0625, %v307_v14  ;;  %v95_v27 = vadd.f32 %v94_v18, %v93_v6  ;;  %v122_v28 = vrot.slane %v121_v19, 2  ;;  %v203_v29 = vadd.f32 %v57_v12, %v53_v11 }
  0x57   :  { %v473_v30 = vsel %vm450_vm5, %v335_v20, %v472_v21  ;;  %v149_v33 = vadd.f32 %v148_v22, %v147_v13  ;;  %v176_v34 = vrot.slane %v175_v23, 4  ;;  %v231_v35 = vadd.f32 %v65_v17, %v61_v16 }
  0x58   :  { %v474_v36 = vsel %vm452_vm6, %v339_v24, %v473_v30  ;;  %v96_v37 = vrot.slane %v95_v27, 1  ;;  %v123_v38 = vadd.f32 %v122_v28, %v121_v19  ;;  %v204_v39 = vrot.slane %v203_v29, 4  ;;  %v649_v28 = vld [vmem:[%s1143_s2] ss:$0 sm:$0xff] }
  0x59   :  { %555 = vmatmul.f32.vlgmr.msra.gmra.mxu3 %v474_v36  ;;  %v150_v40 = vrot.slane %v149_v33, 2  ;;  %v177_v41 = vadd.f32 %v176_v34, %v175_v23  ;;  %v232_v42 = vrot.slane %v231_v35, 4  ;;  %v259_v43 = vadd.f32 %v73_v26, %v69_v25 }
  0x5a   :  { %v97_v44 = vadd.f32 %v96_v37, %v95_v27  ;;  %v124_v45 = vrot.slane %v123_v38, 1  ;;  %v205_v46 = vadd.f32 %v204_v39, %v203_v29  ;;  %v287_v47 = vadd.f32 %v81_v32, %v77_v31 }
  0x5b   :  { %v151_v48 = vadd.f32 %v150_v40, %v149_v33  ;;  %v178_v49 = vrot.slane %v177_v41, 2  ;;  %v233_v50 = vadd.f32 %v232_v42, %v231_v35  ;;  %v260_v51 = vrot.slane %v259_v43, 4 }
  0x5c   :  { %v125_v52 = vadd.f32 %v124_v45, %v123_v38  ;;  %v206_v53 = vrot.slane %v205_v46, 2  ;;  %v288_v54 = vrot.slane %v287_v47, 4  ;;  %v309_v55 = vmul.f32 0.0625, %v97_v44 }
  0x5d   :  { %v152_v56 = vrot.slane %v151_v48, 1  ;;  %v179_v57 = vadd.f32 %v178_v49, %v177_v41  ;;  %v234_v58 = vrot.slane %v233_v50, 2  ;;  %v261_v59 = vadd.f32 %v260_v51, %v259_v43  ;;  %v584_v43 = vld [vmem:[%s1144_s3] sm:$0x7]  ;;  %s680_s3 = smov 3  }
  0x5e   :  { %v207_v60 = vadd.f32 %v206_v53, %v205_v46  ;;  %v289_v61 = vadd.f32 %v288_v54, %v287_v47  ;;  %v313_v62 = vmul.f32 0.0625, %v125_v52  ;;  %vm559_vm7 = vcmask 23552  }
  0x5f   :  { %v153_v63 = vadd.f32 %v152_v56, %v151_v48  ;;  %v180_v0 = vrot.slane %v179_v57, 1  ;;  %v235_v1 = vadd.f32 %v234_v58, %v233_v50  ;;  %v262_v2 = vrot.slane %v261_v59, 2 }
  0x60   :  { %v208_v3 = vrot.slane %v207_v60, 1  ;;  %v290_v4 = vrot.slane %v289_v61, 2  ;;  %v454_v5 = vsel %vm440_vm0, %v313_v62, %v309_v55  ;;  %vm588_vm8 = vcmask 1042432  }
  0x61   :  { %v181_v6 = vadd.f32 %v180_v0, %v179_v57  ;;  %v236_v7 = vrot.slane %v235_v1, 1  ;;  %v263_v8 = vadd.f32 %v262_v2, %v261_v59  ;;  %v317_v9 = vmul.f32 0.0625, %v153_v63  ;;  %644 = vmatpush.msk.msrb.mxu0 %vm588_vm8, %v584_v43 }
  0x62   :  { %v209_v10 = vadd.f32 %v208_v3, %v207_v60  ;;  %v291_v11 = vadd.f32 %v290_v4, %v289_v61  ;;  %vm621_vm13 = vcmask 72704  }
  0x63   :  { %v237_v12 = vadd.f32 %v236_v7, %v235_v1  ;;  %v264_v13 = vrot.slane %v263_v8, 1  ;;  %v321_v14 = vmul.f32 0.0625, %v181_v6  ;;  %v455_v15 = vsel %vm442_vm1, %v317_v9, %v454_v5 }
  0x64   :  { %v292_v16 = vrot.slane %v291_v11, 1  ;;  %v325_v17 = vmul.f32 0.0625, %v209_v10 }
  0x65   :  { %v265_v18 = vadd.f32 %v264_v13, %v263_v8  ;;  %v329_v19 = vmul.f32 0.0625, %v237_v12  ;;  %v456_v20 = vsel %vm444_vm2, %v321_v14, %v455_v15 }
  0x66   :  { %v293_v21 = vadd.f32 %v292_v16, %v291_v11  ;;  %v457_v22 = vsel %vm446_vm3, %v325_v17, %v456_v20 }
  0x67   :  { %v333_v23 = vmul.f32 0.0625, %v265_v18  ;;  %v458_v24 = vsel %vm448_vm4, %v329_v19, %v457_v22 }
  0x68   :  { %v337_v25 = vmul.f32 0.0625, %v293_v21 }
  0x69   :  { %v459_v26 = vsel %vm450_vm5, %v333_v23, %v458_v24 }
  0x6a   :  { %v460_v27 = vsel %vm452_vm6, %v337_v25, %v459_v26 }
  0x6b   :  { %515 = vmatmul.f32.vlgmr.msra.gmra.mxu1 %v460_v27 }
  0xb9   :  { %v536_v32 = vpop.f32.mrf.mxu2 }
  0xc4   :  { %v496_v29 = vpop.f32.mrf.mxu0 }
  0xc5   :  { %v497_v30 = vadd.f32 %v649_v28, %v496_v29 }
  0xdc   :  { %v556_v34 = vpop.f32.mrf.mxu3 }
  0xe8   :  { %v516_v31 = vpop.f32.mrf.mxu1 }
  0xe9   :  { %v517_v33 = vadd.f32 %v516_v31, %v497_v30 }
  0xeb   :  { %v537_v35 = vadd.f32 %v536_v32, %v517_v33 }
  0xed   :  { %v557_v36 = vadd.f32 %v556_v34, %v537_v35 }
  0xef   :  { %v560_v37 = vsel %vm559_vm7, %v557_v36, -inf  ;;  %623 = vst.msk [vmem:[%s1146_s5] sm:$0xff] %vm559_vm7, %v557_v36  ;;  %s681_s5 = smov 125  }
  0xf0   :  { %561 = vmax.xlane.f32.xlu0 %v560_v37 }
 0x163   :  { %v562_v38 = vpop.xlane.xlu0 %561 }
 0x164   :  { %v563_v39 = vsub.f32 %v557_v36, %v562_v38 }
 0x166   :  { %v564_v40 = vmul.f32 1.442695, %v563_v39 }
 0x168   :  { %650 = vpow2.f32 %v564_v40 }
 0x16e   :  { %v651_v41 = vpop.eup %650 }
 0x16f   :  { %v566_v42 = vsel %vm559_vm7, %v651_v41, 0.0 }
 0x170   :  { %567 = vadd.xlane.f32.xlu0 %v566_v42 }
 0x1e3   :  { %v568_v44 = vpop.xlane.xlu0 %567 }
 0x1e4   :  { %652 = vrcp.f32 %v568_v44  ;;  %v580_v48 = vand.u32 2147483648, %v568_v44  ;;  %v578_v50 = vand.u32 2147483647, %v568_v44  ;;  %vm574_vm10 = vweird.f32 %v568_v44 }
 0x1e6   :  { %v581_v52 = vor.u32 1.1754944e-38, %v580_v48  ;;  %vm579_vm12 = vcmp.eq.f32.partialorder %v578_v50, 8.507059e+37 }
 0x1ea   :  { %v653_v45 = vpop.eup %652 }
 0x1eb   :  { %v570_v46 = vmul.f32 %v653_v45, %v568_v44  ;;  %vm575_vm9 = vweird.f32 %v653_v45 }
 0x1ec   :  { %vm576_vm11 = vmor %vm574_vm10, %vm575_vm9 }
 0x1ed   :  { %v571_v47 = vsub.f32 1.0, %v570_v46 }
 0x1ef   :  { %v572_v49 = vmul.f32 %v653_v45, %v571_v47 }
 0x1f1   :  { %v573_v51 = vadd.f32 %v653_v45, %v572_v49 }
 0x1f3   :  { %v577_v53 = vsel %vm576_vm11, %v653_v45, %v573_v51 }
 0x1f4   :  { %v582_v54 = vsel %vm579_vm12, %v581_v52, %v577_v53 }
 0x1f5   :  { %v583_v55 = vmul.f32 %v651_v41, %v582_v54 }
 0x1f7   :  { %645 = vmatmul.msk.f32.vlgmr.msrb.gmra.mxu0 %vm559_vm7, %v583_v55 }
 0x274   :  { %v609_v56 = vpop.f32.mrf.mxu0 }
 0x275   :  { %613 = vrot.lane.b32.xlu1 %v609_v56, %s680_s3 }
 0x2e7   :  { %v614_v57 = vpop.permute.xlu1 %613 }
 0x2e8   :  { %v616_v58 = vmul.f32 %v614_v57, %v557_v36 }
 0x2ea   :  { %618 = vrot.lane.b32.xlu1 %v616_v58, %s681_s5 }
 0x35c   :  { %v619_v59 = vpop.permute.xlu1 %618 }
 0x35d   :  { %622 = vst.msk [vmem:[#allocation2] sm:$0xff] %vm621_vm13, %v619_v59 }
 0x35e   :  { %634 = dma.vmem_to_hbm [thread:$0]  %s630_s26, 128, %s632_s29, [#allocation3]  }
 0x35f   :  { %678 = dma.done.wait [#allocation3], 128  }
 0x360   :  { %679 = vsyncadd [#allocation3], 4294967168 }
 0x361   :  { %643 = vsyncpa [#allocation3], 1 }

</bundles_post_ra>
